<compile_context>
chip_gen: v7x
topology: tpu7x:2x2x1
jax: 0.10.0
libtpu: 0.0.40
codegen_flags: <defaults>
</compile_context>

<pallas_src>
import functools

import jax
import jax.numpy as jnp
from jax.experimental import pallas as pl
from jax.experimental.pallas import tpu as pltpu

EPS = 1e-3


def _round_up(x, m):
    return (x + m - 1) // m * m


def stats_kernel(p_ref, w_ref, gamma_ref, beta_ref, scale_ref, shift_ref,
                 acc_sum, acc_sq, *, m_valid):
    """Grid = (m_tile,). Accumulate per-channel sum / sum-of-squares of the
    bias-free conv output, finalize fused BN (scale, shift) on the last tile."""
    mt = pl.program_id(0)

    @pl.when(mt == 0)
    def _init():
        acc_sum[...] = jnp.zeros_like(acc_sum)
        acc_sq[...] = jnp.zeros_like(acc_sq)

    # y[c, m] = sum_k W[c, k] * patches_T[k, m]  (conv WITHOUT bias: with
    # train-mode batch stats the conv bias cancels exactly in (y - mean)).
    y = jnp.dot(w_ref[...], p_ref[...], preferred_element_type=jnp.float32)

    # Zero-padded M columns give y == 0 exactly (no bias added), so they drop
    # out of both sums with no masking / iota needed.
    acc_sum[...] += jnp.sum(y, axis=1, keepdims=True)
    acc_sq[...] += jnp.sum(y * y, axis=1, keepdims=True)

    @pl.when(mt == pl.num_programs(0) - 1)
    def _finalize():
        inv_m = jnp.float32(1.0 / m_valid)
        mean = acc_sum[...] * inv_m
        var = jnp.maximum(acc_sq[...] * inv_m - mean * mean, 0.0)  # biased var
        inv_std = jax.lax.rsqrt(var + EPS)            # EUP, once per channel
        scale = gamma_ref[...] * inv_std
        scale_ref[...] = scale
        shift_ref[...] = beta_ref[...] - mean * scale


def apply_kernel(p_ref, w_ref, scale_ref, shift_ref, out_ref):
    """Grid = (m_tile,), fully parallel: recompute the conv tile and store
    relu(y * scale + shift) to a lane-dense [Cout_pad8, tile_m] block."""
    y = jnp.dot(w_ref[...], p_ref[...], preferred_element_type=jnp.float32)
    out_ref[...] = jnp.maximum(y * scale_ref[...] + shift_ref[...], 0.0)


def basic_conv2d(x, conv_w, conv_b, gamma, beta, padding, *,
                 tile_m=2048, use_bf16_matmul=True):
    """x: [N, Cin, H, W] f32 (NCHW). conv_w: [Cout, Cin, kh, kw]. conv_b is
    accepted for API parity but cancels analytically under train-mode BN."""
    del conv_b  # exactly cancelled by batch-mean subtraction
    N, Cin, H, W = x.shape
    Cout, _, kh, kw = conv_w.shape
    p = padding
    Hout = H + 2 * p - kh + 1
    Wout = W + 2 * p - kw + 1

    M = N * Hout * Wout
    K = Cin * kh * kw
    K_pad = _round_up(K, 8)          # sublane multiple only (no 128-pad of K)
    C_pad = _round_up(Cout, 8)
    tile_m = max(128, _round_up(min(tile_m, M), 128))
    M_pad = _round_up(M, tile_m)
    num_m = M_pad // tile_m

    # --- glue: im2col, transposed to [K, M] so the huge M axis is the lane axis ---
    xp = jnp.pad(x, ((0, 0), (0, 0), (p, p), (p, p)))
    cols = []
    for i in range(kh):
        for j in range(kw):
            cols.append(xp[:, :, i:i + Hout, j:j + Wout])      # [N, Cin, Ho, Wo]
    # [N, Cin, kh*kw, Ho, Wo] -> [Cin, kh*kw, N, Ho, Wo] -> [K, M]
    # (K is Cin-major then (kh,kw), matching conv_w.reshape(Cout, K)).
    patches_t = jnp.stack(cols, axis=2).transpose(1, 2, 0, 3, 4).reshape(K, M)
    patches_t = jnp.pad(patches_t, ((0, K_pad - K), (0, M_pad - M)))

    w_mat = jnp.pad(conv_w.reshape(Cout, K), ((0, C_pad - Cout), (0, K_pad - K)))
    g_col = jnp.pad(gamma.reshape(Cout, 1), ((0, C_pad - Cout), (0, 0)))
    b_col = jnp.pad(beta.reshape(Cout, 1), ((0, C_pad - Cout), (0, 0)))

    # bf16 MXU inputs by default (native on v5e/v6e/v7x); accumulation and all
    # batch statistics stay f32 inside the kernels.
    mxu_dtype = jnp.bfloat16 if use_bf16_matmul else jnp.float32
    patches_t = patches_t.astype(mxu_dtype)
    w_mat = w_mat.astype(mxu_dtype)
    itemsize = jnp.dtype(mxu_dtype).itemsize

    patches_spec = pl.BlockSpec((K_pad, tile_m), lambda mt: (0, mt))
    weight_spec = pl.BlockSpec((C_pad, K_pad), lambda mt: (0, 0))   # resident
    chan_spec = pl.BlockSpec((C_pad, 1), lambda mt: (0, 0))         # resident
    # NOTE: if DMA is still exposed at large M, add
    # pipeline_mode=pl.Buffered(3) to patches_spec (one extra tile of VMEM).

    matmul_flops = 2 * C_pad * K_pad * M_pad
    stream_bytes = K_pad * M_pad * itemsize + C_pad * K_pad * itemsize
    stats_cost = pl.CostEstimate(
        flops=matmul_flops + 4 * C_pad * M_pad,
        transcendentals=C_pad,
        bytes_accessed=stream_bytes + 4 * C_pad * 4)
    apply_cost = pl.CostEstimate(
        flops=matmul_flops + 3 * C_pad * M_pad,
        transcendentals=0,
        bytes_accessed=stream_bytes + C_pad * M_pad * 4 + 2 * C_pad * 4)

    # VMEM cap: tiles here are tiny (<1 MiB double-buffered); 48 MiB keeps
    # headroom on v7x's 64 MiB physical VMEM while allowing larger tile_m
    # sweeps on v5e/v6e (128 MiB).
    vmem_cap = 48 * 1024 * 1024

    # ---- pass 1: batch statistics -> fused (scale, shift) ----
    scale, shift = pl.pallas_call(
        functools.partial(stats_kernel, m_valid=M),
        out_shape=(jax.ShapeDtypeStruct((C_pad, 1), jnp.float32),
                   jax.ShapeDtypeStruct((C_pad, 1), jnp.float32)),
        grid_spec=pltpu.PrefetchScalarGridSpec(
            num_scalar_prefetch=0,
            grid=(num_m,),
            in_specs=[patches_spec, weight_spec, chan_spec, chan_spec],
            out_specs=[pl.BlockSpec((C_pad, 1), lambda mt: (0, 0)),
                       pl.BlockSpec((C_pad, 1), lambda mt: (0, 0))],
            scratch_shapes=[pltpu.VMEM((C_pad, 1), jnp.float32),   # sum
                            pltpu.VMEM((C_pad, 1), jnp.float32)],  # sum of sq
        ),
        compiler_params=pltpu.CompilerParams(
            dimension_semantics=("arbitrary",),        # sequential accumulation
            vmem_limit_bytes=vmem_cap),
        cost_estimate=stats_cost,
    )(patches_t, w_mat, g_col, b_col)

    # ---- pass 2: recompute conv tile, apply BN + ReLU (fully parallel) ----
    out_t = pl.pallas_call(
        apply_kernel,
        out_shape=jax.ShapeDtypeStruct((C_pad, M_pad), jnp.float32),
        grid_spec=pltpu.PrefetchScalarGridSpec(
            num_scalar_prefetch=0,
            grid=(num_m,),
            in_specs=[patches_spec, weight_spec, chan_spec, chan_spec],
            out_specs=pl.BlockSpec((C_pad, tile_m), lambda mt: (0, mt)),
        ),
        compiler_params=pltpu.CompilerParams(
            dimension_semantics=("parallel",),         # v7x: shard over both TCs
            vmem_limit_bytes=vmem_cap),
        cost_estimate=apply_cost,
    )(patches_t, w_mat, scale, shift)

    # --- glue: strip padding (true-size only), back to NCHW ---
    out = out_t[:Cout, :M].reshape(Cout, N, Hout, Wout)
    return out.transpose(1, 0, 2, 3)


def reference(x, conv_w, conv_b, gamma, beta, padding):
    y = jax.lax.conv_general_dilated(
        x, conv_w, window_strides=(1, 1),
        padding=((padding, padding), (padding, padding)),
        dimension_numbers=("NCHW", "OIHW", "NCHW"))
    y = y + conv_b.reshape(1, -1, 1, 1)
    mean = jnp.mean(y, axis=(0, 2, 3), keepdims=True)
    var = jnp.mean((y - mean) ** 2, axis=(0, 2, 3), keepdims=True)
    y = (y - mean) * jax.lax.rsqrt(var + EPS)
    y = y * gamma.reshape(1, -1, 1, 1) + beta.reshape(1, -1, 1, 1)
    return jnp.maximum(y, 0.0)


if __name__ == "__main__":
    # Module config: BasicConv2d(in_channels=4, out_channels=8, kernel_size=3, padding=1)
    N, Cin, H, W = 2, 4, 16, 16
    Cout, kh, kw, pad = 8, 3, 3, 1

    key = jax.random.PRNGKey(0)
    kx, kw_, kb, kg, kbeta = jax.random.split(key, 5)
    x = jax.random.normal(kx, (N, Cin, H, W), dtype=jnp.float32)
    conv_w = jax.random.normal(kw_, (Cout, Cin, kh, kw), dtype=jnp.float32) * 0.1
    conv_b = jax.random.normal(kb, (Cout,), dtype=jnp.float32) * 0.1
    gamma = 1.0 + 0.1 * jax.random.normal(kg, (Cout,), dtype=jnp.float32)
    beta = 0.1 * jax.random.normal(kbeta, (Cout,), dtype=jnp.float32)

    ref = reference(x, conv_w, conv_b, gamma, beta, pad)

    # f32 MXU path, tight tolerance; tile_m=128 exercises the multi-tile
    # stats + apply grids (M = 512 -> 4 tiles per pass).
    out_f32 = basic_conv2d(x, conv_w, conv_b, gamma, beta, pad,
                           tile_m=128, use_bf16_matmul=False)
    out_f32 = jax.block_until_ready(out_f32)
    assert out_f32.shape == (N, Cout, H, W)
    assert jnp.allclose(out_f32, ref, atol=1e-4, rtol=1e-4), \
        float(jnp.max(jnp.abs(out_f32 - ref)))

    # Production default (bf16 MXU inputs, f32 accumulation/stats): looser tol.
    out_bf16 = basic_conv2d(x, conv_w, conv_b, gamma, beta, pad, tile_m=128)
    out_bf16 = jax.block_until_ready(out_bf16)
    assert out_bf16.shape == (N, Cout, H, W)
    assert jnp.allclose(out_bf16, ref, atol=1e-1, rtol=1e-1), \
        float(jnp.max(jnp.abs(out_bf16 - ref)))

    print("KERNEL_OK")
</pallas_src>

<mosaic_0001>
module attributes {stable_mosaic.version = 11 : i64} {
  func.func @stats_kernel(%arg0: i32, %arg1: memref<40x128xf32, #tpu.memory_space<vmem>>, %arg2: memref<8x40xf32, #tpu.memory_space<vmem>>, %arg3: memref<8x1xf32, #tpu.memory_space<vmem>>, %arg4: memref<8x1xf32, #tpu.memory_space<vmem>>, %arg5: memref<8x1xf32, #tpu.memory_space<vmem>>, %arg6: memref<8x1xf32, #tpu.memory_space<vmem>>, %arg7: memref<8x1xf32, #tpu.memory_space<vmem>>, %arg8: memref<8x1xf32, #tpu.memory_space<vmem>>) attributes {dimension_semantics = [#tpu.dimension_semantics<arbitrary>], iteration_bounds = array<i64: 4>, scalar_prefetch = 0 : i64, scratch_operands = 2 : i64, tpu.core_type = #tpu.core_type<tc>, window_params = [{transform_indices = @transform_0, window_bounds = array<i64: 40, 128>}, {pipeline_mode = #tpu.pipeline_mode<synchronous>, transform_indices = @transform_1, window_bounds = array<i64: 8, 40>}, {pipeline_mode = #tpu.pipeline_mode<synchronous>, transform_indices = @transform_2, window_bounds = array<i64: 8, 1>}, {pipeline_mode = #tpu.pipeline_mode<synchronous>, transform_indices = @transform_3, window_bounds = array<i64: 8, 1>}, {pipeline_mode = #tpu.pipeline_mode<synchronous>, transform_indices = @transform_4, window_bounds = array<i64: 8, 1>}, {pipeline_mode = #tpu.pipeline_mode<synchronous>, transform_indices = @transform_5, window_bounds = array<i64: 8, 1>}]} {
    %c0_i32 = arith.constant 0 : i32
    %0 = arith.cmpi eq, %arg0, %c0_i32 : i32
    %1 = arith.extui %0 : i1 to i32
    %c0_i32_0 = arith.constant 0 : i32
    %2 = arith.cmpi ne, %1, %c0_i32_0 : i32
    scf.if %2 {
      %cst_15 = arith.constant 0.000000e+00 : f32
      %20 = vector.broadcast %cst_15 : f32 to vector<8x1xf32>
      %c0_16 = arith.constant 0 : index
      %c0_17 = arith.constant 0 : index
      %21 = vector.load %arg7[%c0_16, %c0_17] : memref<8x1xf32, #tpu.memory_space<vmem>>, vector<8x1xf32>
      tpu.vector_store %arg7[%c0_16, %c0_17], %20 {strides = array<i32>} : memref<8x1xf32, #tpu.memory_space<vmem>>, vector<8x1xf32>,
      %cst_18 = arith.constant 0.000000e+00 : f32
      %22 = vector.broadcast %cst_18 : f32 to vector<8x1xf32>
      %c0_19 = arith.constant 0 : index
      %c0_20 = arith.constant 0 : index
      %23 = vector.load %arg8[%c0_19, %c0_20] : memref<8x1xf32, #tpu.memory_space<vmem>>, vector<8x1xf32>
      tpu.vector_store %arg8[%c0_19, %c0_20], %22 {strides = array<i32>} : memref<8x1xf32, #tpu.memory_space<vmem>>, vector<8x1xf32>,
    } else {
    }
    %c0 = arith.constant 0 : index
    %c0_1 = arith.constant 0 : index
    %3 = vector.load %arg2[%c0, %c0_1] : memref<8x40xf32, #tpu.memory_space<vmem>>, vector<8x40xf32>
    %c0_2 = arith.constant 0 : index
    %c0_3 = arith.constant 0 : index
    %4 = vector.load %arg1[%c0_2, %c0_3] : memref<40x128xf32, #tpu.memory_space<vmem>>, vector<40x128xf32>
    %cst = arith.constant dense<0.000000e+00> : vector<8x128xf32>
    %5 = tpu.matmul %3, %4, %cst {dimension_numbers = #tpu.dot_dimension_numbers<[1], [0], [0], [1], [0, 0, 1, 1], [], []>} : vector<8x40xf32>, vector<40x128xf32>, vector<8x128xf32> -> vector<8x128xf32>
    %c0_4 = arith.constant 0 : index
    %c0_5 = arith.constant 0 : index
    %6 = vector.load %arg7[%c0_4, %c0_5] : memref<8x1xf32, #tpu.memory_space<vmem>>, vector<8x1xf32>
    %cst_6 = arith.constant dense<0.000000e+00> : vector<8xf32>
    %7 = vector.multi_reduction <add>, %5, %cst_6 [1] : vector<8x128xf32> to vector<8xf32>
    %8 = vector.shape_cast %7 : vector<8xf32> to vector<8x1xf32>
    %9 = arith.addf %6, %8 : vector<8x1xf32>
    %c0_7 = arith.constant 0 : index
    %c0_8 = arith.constant 0 : index
    %10 = vector.load %arg7[%c0_7, %c0_8] : memref<8x1xf32, #tpu.memory_space<vmem>>, vector<8x1xf32>
    tpu.vector_store %arg7[%c0_7, %c0_8], %9 {strides = array<i32>} : memref<8x1xf32, #tpu.memory_space<vmem>>, vector<8x1xf32>,
    %c0_9 = arith.constant 0 : index
    %c0_10 = arith.constant 0 : index
    %11 = vector.load %arg8[%c0_9, %c0_10] : memref<8x1xf32, #tpu.memory_space<vmem>>, vector<8x1xf32>
    %12 = arith.mulf %5, %5 : vector<8x128xf32>
    %cst_11 = arith.constant dense<0.000000e+00> : vector<8xf32>
    %13 = vector.multi_reduction <add>, %12, %cst_11 [1] : vector<8x128xf32> to vector<8xf32>
    %14 = vector.shape_cast %13 : vector<8xf32> to vector<8x1xf32>
    %15 = arith.addf %11, %14 : vector<8x1xf32>
    %c0_12 = arith.constant 0 : index
    %c0_13 = arith.constant 0 : index
    %16 = vector.load %arg8[%c0_12, %c0_13] : memref<8x1xf32, #tpu.memory_space<vmem>>, vector<8x1xf32>
    tpu.vector_store %arg8[%c0_12, %c0_13], %15 {strides = array<i32>} : memref<8x1xf32, #tpu.memory_space<vmem>>, vector<8x1xf32>,
    %c3_i32 = arith.constant 3 : i32
    %17 = arith.cmpi eq, %arg0, %c3_i32 : i32
    %18 = arith.extui %17 : i1 to i32
    %c0_i32_14 = arith.constant 0 : i32
    %19 = arith.cmpi ne, %18, %c0_i32_14 : i32
    scf.if %19 {
      %c0_15 = arith.constant 0 : index
      %c0_16 = arith.constant 0 : index
      %20 = vector.load %arg7[%c0_15, %c0_16] : memref<8x1xf32, #tpu.memory_space<vmem>>, vector<8x1xf32>
      %cst_17 = arith.constant 0.001953125 : f32
      %21 = vector.broadcast %cst_17 : f32 to vector<8x1xf32>
      %22 = arith.mulf %20, %21 : vector<8x1xf32>
      %c0_18 = arith.constant 0 : index
      %c0_19 = arith.constant 0 : index
      %23 = vector.load %arg8[%c0_18, %c0_19] : memref<8x1xf32, #tpu.memory_space<vmem>>, vector<8x1xf32>
      %cst_20 = arith.constant 0.001953125 : f32
      %24 = vector.broadcast %cst_20 : f32 to vector<8x1xf32>
      %25 = arith.mulf %23, %24 : vector<8x1xf32>
      %26 = arith.mulf %22, %22 : vector<8x1xf32>
      %27 = arith.subf %25, %26 : vector<8x1xf32>
      %cst_21 = arith.constant 0.000000e+00 : f32
      %28 = vector.broadcast %cst_21 : f32 to vector<8x1xf32>
      %29 = arith.maximumf %27, %28 : vector<8x1xf32>
      %cst_22 = arith.constant 1.000000e-03 : f32
      %30 = vector.broadcast %cst_22 : f32 to vector<8x1xf32>
      %31 = arith.addf %29, %30 : vector<8x1xf32>
      %32 = math.rsqrt %31 : vector<8x1xf32>
      %c0_23 = arith.constant 0 : index
      %c0_24 = arith.constant 0 : index
      %33 = vector.load %arg3[%c0_23, %c0_24] : memref<8x1xf32, #tpu.memory_space<vmem>>, vector<8x1xf32>
      %34 = arith.mulf %33, %32 : vector<8x1xf32>
      %c0_25 = arith.constant 0 : index
      %c0_26 = arith.constant 0 : index
      %35 = vector.load %arg5[%c0_25, %c0_26] : memref<8x1xf32, #tpu.memory_space<vmem>>, vector<8x1xf32>
      tpu.vector_store %arg5[%c0_25, %c0_26], %34 {strides = array<i32>} : memref<8x1xf32, #tpu.memory_space<vmem>>, vector<8x1xf32>,
      %c0_27 = arith.constant 0 : index
      %c0_28 = arith.constant 0 : index
      %36 = vector.load %arg4[%c0_27, %c0_28] : memref<8x1xf32, #tpu.memory_space<vmem>>, vector<8x1xf32>
      %37 = arith.mulf %22, %34 : vector<8x1xf32>
      %38 = arith.subf %36, %37 : vector<8x1xf32>
      %c0_29 = arith.constant 0 : index
      %c0_30 = arith.constant 0 : index
      %39 = vector.load %arg6[%c0_29, %c0_30] : memref<8x1xf32, #tpu.memory_space<vmem>>, vector<8x1xf32>
      tpu.vector_store %arg6[%c0_29, %c0_30], %38 {strides = array<i32>} : memref<8x1xf32, #tpu.memory_space<vmem>>, vector<8x1xf32>,
    } else {
    }
    return
  }
  func.func @transform_0(%arg0: i32) -> (i32, i32) {
    %c0_i32 = arith.constant 0 : i32
    %c0_i32_0 = arith.constant 0 : i32
    return %c0_i32, %arg0 : i32, i32
  }
  func.func @transform_1(%arg0: i32) -> (i32, i32) {
    %c0_i32 = arith.constant 0 : i32
    %c0_i32_0 = arith.constant 0 : i32
    %c0_i32_1 = arith.constant 0 : i32
    return %c0_i32, %c0_i32_0 : i32, i32
  }
  func.func @transform_2(%arg0: i32) -> (i32, i32) {
    %c0_i32 = arith.constant 0 : i32
    %c0_i32_0 = arith.constant 0 : i32
    %c0_i32_1 = arith.constant 0 : i32
    return %c0_i32, %c0_i32_0 : i32, i32
  }
  func.func @transform_3(%arg0: i32) -> (i32, i32) {
    %c0_i32 = arith.constant 0 : i32
    %c0_i32_0 = arith.constant 0 : i32
    %c0_i32_1 = arith.constant 0 : i32
    return %c0_i32, %c0_i32_0 : i32, i32
  }
  func.func @transform_4(%arg0: i32) -> (i32, i32) {
    %c0_i32 = arith.constant 0 : i32
    %c0_i32_0 = arith.constant 0 : i32
    %c0_i32_1 = arith.constant 0 : i32
    return %c0_i32, %c0_i32_0 : i32, i32
  }
  func.func @transform_5(%arg0: i32) -> (i32, i32) {
    %c0_i32 = arith.constant 0 : i32
    %c0_i32_0 = arith.constant 0 : i32
    %c0_i32_1 = arith.constant 0 : i32
    return %c0_i32, %c0_i32_0 : i32, i32
  }
}

</mosaic_0001>

<bundles_post_ra>
// kernel: tpu_custom_call.1
= control target key start
LH: loop header
LB: loop body
LE: loop exit
PB: predicated region body
PF: predicated region fallthrough
CT: control target
= control target key end

     0   :  { %11 = vsyncpa [#allocation5], 0  ;;  %s702_s0 = inlined_call_operand.hbm [shape: f32[40,512], index: 0, kind: input, shape index: {}]   ;;  %s703_s1 = inlined_call_operand.vmem [shape: f32[8,40], index: 1, kind: input, shape index: {}]   ;;  %s704_s2 = inlined_call_operand.vmem [shape: f32[8,1], index: 2, kind: input, shape index: {}]   ;;  %s705_s3 = inlined_call_operand.vmem [shape: f32[8,1], index: 3, kind: input, shape index: {}]   ;;  %s706_s4 = inlined_call_operand.vmem [shape: f32[8,1], index: 4, kind: output, shape index: {0}]   ;;  %s707_s5 = inlined_call_operand.vmem [shape: f32[8,1], index: 5, kind: output, shape index: {1}]  }
   0x1   :  { %13 = vsyncpa [#allocation5 + $0x1], 0  ;;  %s580_s18 = smov 0   ;;  %s582_s19 = smov 0  }
   0x2   :  { %s584_s20 = smov 0   ;;  %s586_s21 = smov 0  }
   0x3 LB: > { %s599_s22 = sadd.s32 4294967295, %s540_s21   ;;  %s602_s23 = sadd.s32 1, %s540_s21   ;;  %s540_s21 = sphi %s586_s21, %s713_s21   ;;  %s536_s20 = sphi %s584_s20, %s712_s20   ;;  %s532_s19 = sphi %s582_s19, %s711_s19   ;;  %s528_s18 = sphi %s580_s18, %s710_s18  }
   0x4   : > { %s23_s24 = ssub.s32 %s540_s21, %s602_s23  ;;  %s26_s25 = sadd.s32 1, %s536_s20 }
   0x5   : > { %p24_p0 = scmp.eq.s32.totalorder %s23_s24, 0  ;;  %p33_p1 = scmp.ne.s32.totalorder %s536_s20, %s532_s19 }
   0x6   : > { %p34_p2 = scmp.eq.s32.totalorder %s540_s21, 0  ;;  %p39_p3 = scmp.ne.s32.totalorder %s532_s19, %s528_s18 }
   0x7   : > { %s612_s26 = scalar_select %p24_p0, %s536_s20, %s26_s25  }
   0x8   : > { %p35_p4 = por %p34_p2, %p33_p1  ;;  %p40_p5 = scmp.eq.s32.totalorder %s599_s22, 0 }
   0x9   : > { %p434_p6 = scmp.lt.s32.totalorder %s540_s21, 4  ;;  %s177_s28 = sand.u32 1, %s536_s20  }
   0xa   : > { %p616_p7 = por %p40_p5, %p39_p3  ;;  %s426_s29 = smul.u32 40, %s177_s28 }
   0xb   : > { %s394_s30 = sshll.u32 %s540_s21, 7  ;;  %p622_p8 = pnand %p434_p6, %p35_p4 }
   0xc   : > { %s629_s9 = scalar_lea.hbm %s702_s0, %s394_s30  ;;  %s181_s10 = scalar_lea.vmem [#allocation4], %s426_s29 }
   0xd   : > { %s187_s11 = sshll.u32 %s181_s10, 4  ;;  %s633_s12 = scalar_lea.sflag [#allocation5], %s177_s28  ;;  %s631_s11 = int_to_ptr.vmem [resolvable:$true] %s187_s11 }
   0xe   : > { %s476_s13 = scalar_lea.hbm %s629_s9, 640  ;;  %p478_p10 = pneg %p622_p8 }
   0xf   : > { %p477_p9 = scmp.ne.s32.totalorder %s629_s9, %s476_s13  ;;  %s481_s16 = scalar_lea.hbm %s702_s0, 2560 }
  0x10   : > { %p482_p13 = scmp.lt.u32.totalorder %s629_s9, %s702_s0  ;;  %p483_p0 = scmp.lt.u32.totalorder %s481_s16, %s476_s13 }
  0x11   : > { %p479_p11 = pnand %p478_p10, %p477_p9  ;;  %p485_p2 = scmp.lt.u32.totalorder %s476_s13, %s629_s9 }
  0x12   : > { %p484_p1 = por %p483_p0, %p482_p13 }
  0x13   : > { %p480_p12 = pneg %p479_p11 }
  0x14   : > { %p486_p3 = por %p485_p2, %p484_p1 }
  0x16   : > { %p487_p4 = pnand %p486_p3, %p480_p12 }
  0x18   : > { %490 = shalt.err (!%p487_p4)
}
  0x19   : > { %s491_s24 = scalar_lea.vmem %s631_s11, 640  ;;  %s542_s25 = smov [#allocation4]  }
  0x1a   : > { %p492_p5 = scmp.ne.s32.totalorder %s631_s11, %s491_s24  ;;  %s496_s28 = sshll.u32 %s542_s25, 4  ;;  %s497_s28 = int_to_ptr.vmem [resolvable:$false] %s496_s28 }
  0x1b   : > { %s498_s29 = scalar_lea.vmem %s497_s28, 1280  ;;  %p499_p11 = scmp.lt.s32.totalorder %s631_s11, %s497_s28 }
  0x1c   : > { %p494_p6 = pnand %p492_p5, %p478_p10  ;;  %p500_p13 = scmp.lt.s32.totalorder %s498_s29, %s491_s24 }
  0x1e   : > { %p495_p9 = pneg %p494_p6  ;;  %p501_p0 = por %p500_p13, %p499_p11 }
  0x20   : > { %p502_p1 = pnand %p501_p0, %p495_p9 }
  0x22   : > { %505 = shalt.err (!%p502_p1)
}
  0x23   : > { %s543_s30 = smov 512   ;;  %s544_s7 = smov 128  }
  0x24   : > { %s545_s8 = smov 8   ;;  %p395_p10 = scmp.ge.s32.totalorder %s540_s21, 1 }
  0x25   : > { %433 = dma.hbm_to_vmem [thread:$0]  (!%p622_p8), %s629_s9, 640, %s631_s11, %s633_s12, %s543_s30, %s544_s7, %s545_s8  }
  0x26   : > { %p195_p12 = scmp.lt.s32.totalorder %s540_s21, 5 }
  0x28   : > { %p196_p2 = pnand %p395_p10, %p195_p12 }
  0x29   : > { %s201_s10 = sand.u32 (!%p196_p2), 1, %s532_s19  }
  0x2a   : > { %199 = sbr.rel (%p196_p2) target bundleno = 465 (0x1d1), region = 36  ;;  %s202_s14 = scalar_lea.sflag (!%p196_p2), [#allocation5], %s201_s10 }
  0x2b   : > { %s427_s13 = smul.u32 (!%p196_p2), 40, %s201_s10 }
  0x2d   : > { %s205_s15 = scalar_lea.vmem (!%p196_p2), [#allocation4], %s427_s13 }
  0x31   : > { %523 = dma.done.wait (%p616_p7), %s202_s14, 640  }
  0x32   : > { %525 = vsyncadd (%p616_p7), %s202_s14, 4294966656  ;;  %p396_p3 = scmp.ne.s32.totalorder %s599_s22, 0 }
  0x33   : > { %vm231_vm0 = vcmask (!%p396_p3), 7168   ;;  %v546_v0 = vmov (!%p396_p3), 0.0  }
  0x34   : > { %230 = sbr.rel (%p396_p3) target bundleno = 59 (0x3b), region = 44  ;;  %232 = vst.msk [vmem:[#allocation2] sm:$0xff] (!%p396_p3), %vm231_vm0, %v546_v0  ;;  %233 = vst.msk [vmem:[#allocation3] sm:$0xff] (!%p396_p3), %vm231_vm0, %v546_v0 }
  0x3b PF: > { %v235_v1 = vld [vmem:[%s205_s15] sm:$0xff]  ;;  %v236_v2 = vld [vmem:[%s205_s15 + $0x8] sm:$0xff]  ;;  %v237_v3 = vld [vmem:[%s205_s15 + $0x10] sm:$0xff]  ;;  %v547_v4 = vmov 0.0|0.0   ;;  %vm548_vm1 = vmmov 0   ;;  %v549_v7 = vmov 0.0  }
  0x3c   : > { %420 = vmatprep.subr.bf16.mxu0 %v547_v4  ;;  %v421_v5 = vpack.c.bf16 %v236_v2, %v235_v1  ;;  %v238_v6 = vld [vmem:[%s205_s15 + $0x18] sm:$0xff]  ;;  %417 = vmatprep.mubr.msk.f32.mxu0 %vm548_vm1, %v549_v7  ;;  %v239_v9 = vld [vmem:[%s205_s15 + $0x20] sm:$0xff]  ;;  %v234_v10 = vld [vmem:[%s703_s1] sm:$0xff]  ;;  %vm240_vm2 = vcmask 326656   ;;  %vm318_vm3 = vcmask 7168   ;;  %p398_p7 = scmp.ne.s32.totalorder %s599_s22, 3 }
  0x3d   : > { %v424_v8 = vpack.c.bf16 %v238_v6, %v237_v3  ;;  %v314_v14 = vld [vmem:[#allocation2] sm:$0xff]  ;;  %v320_v17 = vld [vmem:[#allocation3] sm:$0xff] }
  0x3e   : > { %422 = vmatpush3.bf16.msra.mxu0 %v421_v5  ;;  %v339_v28 = vld [vmem:[%s704_s2] sm:$0xff] (!%p398_p7) }
  0x3f   : > { %423 = vmatprep.subr.bf16.mxu0 %v547_v4  ;;  %v342_v31 = vld [vmem:[%s705_s3] sm:$0xff] (!%p398_p7) }
  0x42   : > { %425 = vmatpush3.bf16.msra.mxu0 %v424_v8 }
  0x43   : > { %415 = vmatprep.subr.mxu0 %v549_v7 }
  0x46   : > { %416 = vmatpush3.msra.mxu0 %v239_v9 }
  0x47   : > { %418 = vmatmul.mubr.msk.f32.vlgmr.msra.gmra.mrb[0].mxu0 %vm240_vm2, %v234_v10 }
 0x11a   : > { %v310_v11 = vpop.f32.mrb[0].mxu0 }
 0x11b   : > { %315 = vadd.xlane.f32.xlu0 %v310_v11  ;;  %v419_v12 = vpop.f32.mrb[1].mxu0  ;;  %v321_v13 = vmul.f32 %v310_v11, %v310_v11 }
 0x11f   : > { %322 = vadd.xlane.f32.xlu0 %v321_v13 }
 0x1a8   : > { %v316_v15 = vpop.xlane.xlu0 %315 }
 0x1a9   : > { %v317_v16 = vadd.f32 %v316_v15, %v314_v14  ;;  %329 = sbr.rel (%p398_p7) target bundleno = 465 (0x1d1), region = 48 }
 0x1ab   : > { %319 = vst.msk [vmem:[#allocation2] sm:$0xff] %vm318_vm3, %v317_v16 }
 0x1ac   : > { %v323_v18 = vpop.xlane.xlu0 %322 }
 0x1ad   : > { %v324_v19 = vadd.f32 %v323_v18, %v320_v17 }
 0x1af   : > { %325 = vst.msk [vmem:[#allocation3] sm:$0xff] %vm318_vm3, %v324_v19 }
 0x1b2   : > { %v330_v20 = vld [vmem:[#allocation2] sm:$0xff] }
 0x1b3   : > { %v331_v22 = vmul.f32 0.001953125, %v330_v20 }
 0x1b5   : > { %v334_v24 = vmul.f32 %v331_v22, %v331_v22 }
 0x1b6   : > { %v332_v21 = vld [vmem:[#allocation3] sm:$0xff] }
 0x1b7   : > { %v333_v23 = vmul.f32 0.001953125, %v332_v21 }
 0x1b9   : > { %v335_v25 = vsub.f32 %v333_v23, %v334_v24 }
 0x1bb   : > { %v336_v26 = vmax.f32 %v335_v25, 0.0 }
 0x1bd   : > { %v337_v27 = vadd.f32 0.001, %v336_v26 }
 0x1bf   : > { %474 = vrsqrt.f32 %v337_v27 }
 0x1c9   : > { %v475_v29 = vpop.eup %474 }
 0x1ca   : > { %v340_v30 = vmul.f32 %v475_v29, %v339_v28 }
 0x1cc   : > { %341 = vst.msk [vmem:[%s706_s4] sm:$0xff] %vm318_vm3, %v340_v30  ;;  %v343_v32 = vmul.f32 %v340_v30, %v331_v22 }
 0x1ce   : > { %v344_v33 = vsub.f32 %v342_v31, %v343_v32 }
 0x1d0   : > { %345 = vst.msk [vmem:[%s707_s5] sm:$0xff] %vm318_vm3, %v344_v33 }
 0x1d1 PF: > { %p16_p8 = scmp.ge.s32.totalorder %s602_s23, 6   ;;  %s710_s18 = smov %s532_s19 }
 0x1d2   : > { %s711_s19 = smov %s536_s20  ;;  %s712_s20 = smov %s612_s26 }
 0x1d3   : > { %s713_s21 = smov %s602_s23  ;;  %18 = sbr.rel (!%p16_p8) target bundleno = 3 (0x3), region = 88 }
 0x1da   :  { %363 = vsyncpa [#allocation5], 1 }
 0x1db   :  { %365 = vsyncpa [#allocation5 + $0x1], 1 }

</bundles_post_ra>
